<compile_context>
chip_gen: v7x
topology: tpu7x:2x2x1
jax: 0.10.0
libtpu: 0.0.40
codegen_flags: <defaults>
</compile_context>

<pallas_src>
import jax
import jax.numpy as jnp
from jax.experimental import pallas as pl
from jax.experimental.pallas import tpu as pltpu


def _round_up(x, m):
    return ((x + m - 1) // m) * m


# ---------------------------------------------------------------------------
# Kernels
# ---------------------------------------------------------------------------
def _kernel_acc_into_out(x_ref, w_ref, b_ref, o_ref):
    """f32 output: accumulate straight into the resident output block."""
    k = pl.program_id(2)

    @pl.when(k == 0)
    def _():
        o_ref[...] = jnp.zeros_like(o_ref)

    o_ref[...] += jnp.dot(x_ref[...], w_ref[...], preferred_element_type=jnp.float32)

    @pl.when(k == pl.num_programs(2) - 1)
    def _():
        o_ref[...] += b_ref[0]


def _kernel_acc_scratch(x_ref, w_ref, b_ref, o_ref, acc_ref):
    """Non-f32 output: f32 accumulator scratch, cast at finalize."""
    k = pl.program_id(2)

    @pl.when(k == 0)
    def _():
        acc_ref[...] = jnp.zeros_like(acc_ref)

    acc_ref[...] += jnp.dot(x_ref[...], w_ref[...], preferred_element_type=jnp.float32)

    @pl.when(k == pl.num_programs(2) - 1)
    def _():
        o_ref[...] = (acc_ref[...] + b_ref[0]).astype(o_ref.dtype)


# ---------------------------------------------------------------------------
# Wrapper
# ---------------------------------------------------------------------------
def prepare_weight(weight, sign=1, *, compute_dtype=jnp.bfloat16):
    """Fold sign * |W| + dtype cast + transpose into one copy.

    Returns the effective weight in (in_features, out_features) layout. Cache the
    result across calls when the layer is applied repeatedly.
    """
    w_eff = jnp.asarray(float(sign), jnp.float32) * jnp.abs(weight.astype(jnp.float32))
    return w_eff.astype(compute_dtype).T  # (K, N)


def same_sign_linear(x, weight=None, bias=0.0, sign=1, *, prepared_weight=None,
                     tm=512, tn=512, tk=1024, compute_dtype=jnp.bfloat16):
    """y = x @ (sign * |weight|).T + bias.

    x: (M, K). weight: (N, K) — or pass `prepared_weight` = prepare_weight(weight, sign)
    (shape (K, N), sign/abs already folded) to avoid re-preparing W every call.
    Use compute_dtype=jnp.float32 for strict f32 parity (bf16 default halves HBM
    traffic and uses the bf16 MXU rate).
    """
    M, K = x.shape
    if prepared_weight is None:
        assert weight is not None
        prepared_weight = prepare_weight(weight, sign, compute_dtype=compute_dtype)
    Kw, N = prepared_weight.shape
    assert Kw == K
    out_dtype = x.dtype

    # Clamp tiles to the (padded) problem; keep lane dims multiples of 128 and the
    # sublane (M) dim a multiple of 16 (bf16 packs 16 sublanes per vreg).
    tm = min(tm, _round_up(M, 16))
    tn = min(tn, _round_up(N, 128))
    tk = min(tk, _round_up(K, 128))

    Mp = _round_up(M, tm)
    Np = _round_up(N, tn)
    Kp = _round_up(K, tk)

    # Zero padding contributes nothing to the dot; skip the pad when already aligned.
    x_c = x.astype(compute_dtype)
    x_p = x_c if (Mp == M and Kp == K) else jnp.pad(x_c, ((0, Mp - M), (0, Kp - K)))
    w_p = (prepared_weight if (Kp == K and Np == N)
           else jnp.pad(prepared_weight, ((0, Kp - K), (0, Np - N))))
    bias_arr = jnp.asarray(bias, jnp.float32).reshape(1)

    grid = (Mp // tm, Np // tn, Kp // tk)

    f32_out = jnp.dtype(out_dtype) == jnp.dtype(jnp.float32)
    kernel = _kernel_acc_into_out if f32_out else _kernel_acc_scratch
    scratch = [] if f32_out else [pltpu.VMEM((tm, tn), jnp.float32)]

    # VMEM budget from actual tile accounting: double-buffered inputs + output,
    # accumulator scratch (if any), plus a small margin. Keep under v7x's 64 MiB.
    in_sz = jnp.dtype(compute_dtype).itemsize
    out_sz = jnp.dtype(out_dtype).itemsize
    vmem_bytes = (2 * (tm * tk + tk * tn) * in_sz
                  + 2 * tm * tn * out_sz
                  + (0 if f32_out else tm * tn * 4)
                  + (2 << 20))
    vmem_bytes = int(min(max(vmem_bytes, 8 << 20), 60 << 20))

    out = pl.pallas_call(
        kernel,
        out_shape=jax.ShapeDtypeStruct((Mp, Np), out_dtype),
        grid_spec=pltpu.PrefetchScalarGridSpec(
            num_scalar_prefetch=0,
            grid=grid,
            in_specs=[
                # x (tm, tk) tile per (i, k).
                pl.BlockSpec((tm, tk), lambda i, j, k: (i, k)),
                # Weight already (K, N): canonical MXU-native (tk, tn) tile per (k, j).
                pl.BlockSpec((tk, tn), lambda i, j, k: (k, j)),
                # Scalar bias lives in SMEM.
                pl.BlockSpec(memory_space=pltpu.SMEM),
            ],
            # Lane-dense output tile, resident across the k axis.
            out_specs=pl.BlockSpec((tm, tn), lambda i, j, k: (i, j)),
            scratch_shapes=scratch,
        ),
        compiler_params=pltpu.CompilerParams(
            dimension_semantics=("parallel", "parallel", "arbitrary"),
            vmem_limit_bytes=vmem_bytes,
        ),
    )(x_p, w_p, bias_arr)

    return out[:M, :N]


def kaiming_uniform(key, out_features, in_features):
    # nn.init.kaiming_uniform_ defaults (a=0, fan_in, gain=sqrt(2)):
    # bound = gain * sqrt(3 / fan_in)
    gain = jnp.sqrt(2.0)
    bound = gain * jnp.sqrt(3.0 / in_features)
    return jax.random.uniform(
        key, (out_features, in_features), jnp.float32, minval=-bound, maxval=bound
    )


if __name__ == "__main__":
    key = jax.random.PRNGKey(0)
    k_x, k_w, k_x2, k_w2 = jax.random.split(key, 4)

    # --- Small shapes consistent with the module ---------------------------------
    batch, in_features, out_features = 8, 32, 16
    bias = 0.25
    x = jax.random.normal(k_x, (batch, in_features), jnp.float32)
    weight = kaiming_uniform(k_w, out_features, in_features)

    for sign in (1, -1):
        w_eff = float(sign) * jnp.abs(weight)

        # Default bf16 compute path.
        y = jax.block_until_ready(same_sign_linear(x, weight, bias, sign=sign))
        assert y.shape == (batch, out_features)
        y_ref_f32 = x @ w_eff.T + bias
        assert jnp.allclose(y, y_ref_f32, atol=2e-2, rtol=2e-2), "f32 ref mismatch"
        y_ref_bf16 = jnp.dot(x.astype(jnp.bfloat16), w_eff.astype(jnp.bfloat16).T,
                             preferred_element_type=jnp.float32) + bias
        assert jnp.allclose(y, y_ref_bf16, atol=1e-3, rtol=1e-3), "bf16 ref mismatch"

        # Strict-parity escape hatch: f32 compute end to end.
        y32 = jax.block_until_ready(
            same_sign_linear(x, weight, bias, sign=sign, compute_dtype=jnp.float32))
        assert jnp.allclose(y32, y_ref_f32, atol=1e-5, rtol=1e-5), "f32 compute mismatch"

    # --- Moderate, unaligned shapes: exercises padding + multi-k accumulation -----
    M2, K2, N2 = 300, 1300, 260
    x2 = jax.random.normal(k_x2, (M2, K2), jnp.float32)
    w2 = kaiming_uniform(k_w2, N2, K2)
    sign = -1
    w2_eff = float(sign) * jnp.abs(w2)

    # Prepared (cached) weight path.
    w2_prep = prepare_weight(w2, sign)
    y2 = jax.block_until_ready(
        same_sign_linear(x2, bias=bias, sign=sign, prepared_weight=w2_prep))
    assert y2.shape == (M2, N2)
    y2_ref_bf16 = jnp.dot(x2.astype(jnp.bfloat16), w2_eff.astype(jnp.bfloat16).T,
                          preferred_element_type=jnp.float32) + bias
    assert jnp.allclose(y2, y2_ref_bf16, atol=5e-3, rtol=5e-3), "bf16 ref mismatch (big)"
    y2_ref_f32 = x2 @ w2_eff.T + bias
    assert jnp.allclose(y2, y2_ref_f32, atol=1e-1, rtol=3e-2), "f32 ref mismatch (big)"

    # Non-f32 output path (scratch-accumulator kernel).
    y2_bf = jax.block_until_ready(
        same_sign_linear(x2.astype(jnp.bfloat16), w2, bias, sign=sign))
    assert y2_bf.dtype == jnp.bfloat16 and y2_bf.shape == (M2, N2)
    assert jnp.allclose(y2_bf.astype(jnp.float32), y2_ref_bf16, atol=1e-1, rtol=2e-2), \
        "bf16-out mismatch"

    print("KERNEL_OK")
</pallas_src>

<mosaic_0001>
module attributes {stable_mosaic.version = 11 : i64} {
  func.func @_kernel_acc_into_out(%arg0: i32, %arg1: i32, %arg2: i32, %arg3: memref<16x128xbf16, #tpu.memory_space<vmem>>, %arg4: memref<128x128xbf16, #tpu.memory_space<vmem>>, %arg5: memref<1xf32, #tpu.memory_space<smem>>, %arg6: memref<16x128xf32, #tpu.memory_space<vmem>>) attributes {dimension_semantics = [#tpu.dimension_semantics<parallel>, #tpu.dimension_semantics<parallel>, #tpu.dimension_semantics<arbitrary>], iteration_bounds = array<i64: 1, 1, 1>, scalar_prefetch = 0 : i64, scratch_operands = 0 : i64, tpu.core_type = #tpu.core_type<tc>, window_params = [{transform_indices = @transform_0, window_bounds = array<i64: 16, 128>}, {transform_indices = @transform_1, window_bounds = array<i64: 128, 128>}, {transform_indices = @transform_2, window_bounds = array<i64: 1>}, {transform_indices = @transform_3, window_bounds = array<i64: 16, 128>}]} {
    %c0_i32 = arith.constant 0 : i32
    %0 = arith.cmpi eq, %arg2, %c0_i32 : i32
    %1 = arith.extui %0 : i1 to i32
    %c0_i32_0 = arith.constant 0 : i32
    %2 = arith.cmpi ne, %1, %c0_i32_0 : i32
    scf.if %2 {
      %cst_10 = arith.constant 0.000000e+00 : f32
      %12 = vector.broadcast %cst_10 : f32 to vector<16x128xf32>
      %c0_11 = arith.constant 0 : index
      %c0_12 = arith.constant 0 : index
      %13 = vector.load %arg6[%c0_11, %c0_12] : memref<16x128xf32, #tpu.memory_space<vmem>>, vector<16x128xf32>
      tpu.vector_store %arg6[%c0_11, %c0_12], %12 {strides = array<i32>} : memref<16x128xf32, #tpu.memory_space<vmem>>, vector<16x128xf32>,
    } else {
    }
    %c0 = arith.constant 0 : index
    %c0_1 = arith.constant 0 : index
    %3 = vector.load %arg6[%c0, %c0_1] : memref<16x128xf32, #tpu.memory_space<vmem>>, vector<16x128xf32>
    %c0_2 = arith.constant 0 : index
    %c0_3 = arith.constant 0 : index
    %4 = vector.load %arg3[%c0_2, %c0_3] : memref<16x128xbf16, #tpu.memory_space<vmem>>, vector<16x128xbf16>
    %c0_4 = arith.constant 0 : index
    %c0_5 = arith.constant 0 : index
    %5 = vector.load %arg4[%c0_4, %c0_5] : memref<128x128xbf16, #tpu.memory_space<vmem>>, vector<128x128xbf16>
    %cst = arith.constant dense<0.000000e+00> : vector<16x128xf32>
    %6 = tpu.matmul %4, %5, %cst {dimension_numbers = #tpu.dot_dimension_numbers<[1], [0], [0], [1], [0, 0, 1, 1], [], []>} : vector<16x128xbf16>, vector<128x128xbf16>, vector<16x128xf32> -> vector<16x128xf32>
    %7 = arith.addf %3, %6 : vector<16x128xf32>
    %c0_6 = arith.constant 0 : index
    %c0_7 = arith.constant 0 : index
    %8 = vector.load %arg6[%c0_6, %c0_7] : memref<16x128xf32, #tpu.memory_space<vmem>>, vector<16x128xf32>
    tpu.vector_store %arg6[%c0_6, %c0_7], %7 {strides = array<i32>} : memref<16x128xf32, #tpu.memory_space<vmem>>, vector<16x128xf32>,
    %c0_i32_8 = arith.constant 0 : i32
    %9 = arith.cmpi eq, %arg2, %c0_i32_8 : i32
    %10 = arith.extui %9 : i1 to i32
    %c0_i32_9 = arith.constant 0 : i32
    %11 = arith.cmpi ne, %10, %c0_i32_9 : i32
    scf.if %11 {
      %c0_10 = arith.constant 0 : index
      %c0_11 = arith.constant 0 : index
      %12 = vector.load %arg6[%c0_10, %c0_11] : memref<16x128xf32, #tpu.memory_space<vmem>>, vector<16x128xf32>
      %c0_12 = arith.constant 0 : index
      %13 = memref.load %arg5[%c0_12] : memref<1xf32, #tpu.memory_space<smem>>
      %14 = vector.broadcast %13 : f32 to vector<16x128xf32>
      %15 = arith.addf %12, %14 : vector<16x128xf32>
      %c0_13 = arith.constant 0 : index
      %c0_14 = arith.constant 0 : index
      %16 = vector.load %arg6[%c0_13, %c0_14] : memref<16x128xf32, #tpu.memory_space<vmem>>, vector<16x128xf32>
      tpu.vector_store %arg6[%c0_13, %c0_14], %15 {strides = array<i32>} : memref<16x128xf32, #tpu.memory_space<vmem>>, vector<16x128xf32>,
    } else {
    }
    return
  }
  func.func @transform_0(%arg0: i32, %arg1: i32, %arg2: i32) -> (i32, i32) {
    %c0_i32 = arith.constant 0 : i32
    return %arg0, %arg2 : i32, i32
  }
  func.func @transform_1(%arg0: i32, %arg1: i32, %arg2: i32) -> (i32, i32) {
    %c0_i32 = arith.constant 0 : i32
    return %arg2, %arg1 : i32, i32
  }
  func.func @transform_2(%arg0: i32, %arg1: i32, %arg2: i32) -> i32 {
    %c0_i32 = arith.constant 0 : i32
    %c0_i32_0 = arith.constant 0 : i32
    return %c0_i32 : i32
  }
  func.func @transform_3(%arg0: i32, %arg1: i32, %arg2: i32) -> (i32, i32) {
    %c0_i32 = arith.constant 0 : i32
    return %arg0, %arg1 : i32, i32
  }
}

</mosaic_0001>

<bundles_post_ra>
// kernel: tpu_custom_call.1
= control target key start
LH: loop header
LB: loop body
LE: loop exit
PB: predicated region body
PF: predicated region fallthrough
CT: control target
= control target key end

     0   :  { %9 = vsyncpa [#allocation4], 0  ;;  %s395_s0 = inlined_call_operand.hbm [shape: bf16[16,128], index: 0, kind: input, shape index: {}]   ;;  %s396_s1 = inlined_call_operand.hbm [shape: bf16[128,128], index: 1, kind: input, shape index: {}]   ;;  %s397_s2 = inlined_call_operand.<no memory space> [shape: f32[1], index: 2, kind: input, shape index: {}]   ;;  %s398_s3 = inlined_call_operand.hbm [shape: f32[16,128], index: 3, kind: output, shape index: {}]  }
   0x1   :  { %10 = vsyncpa [#allocation7], 0 }
   0x2   :  { %11 = vsyncpa [#allocation5], 0  ;;  %s327_s12 = smov [#allocation3]   ;;  %s255_s16 = scalar_lea.hbm %s395_s0, 128 }
   0x3   :  { %s17_s13 = sshll.u32 %s327_s12, 4  ;;  %p256_p0 = scmp.ne.s32.totalorder %s395_s0, %s255_s16  ;;  %s18_s13 = int_to_ptr.vmem [resolvable:$true] %s17_s13 }
   0x4   :  { %p259_p1 = scmp.lt.u32.totalorder %s255_s16, %s395_s0 }
   0x6   :  { %p261_p2 = pnand %p259_p1, %p256_p0 }
   0x8   :  { %264 = shalt.err (!%p261_p2)
}
   0x9   :  { %s265_s21 = scalar_lea.vmem %s18_s13, 128  ;;  %p270_p4 = scmp.lt.s32.totalorder %s18_s13, %s18_s13 }
   0xa   :  { %p266_p3 = scmp.ne.s32.totalorder %s18_s13, %s265_s21  ;;  %p271_p5 = scmp.lt.s32.totalorder %s265_s21, %s265_s21 }
   0xc   :  { %p272_p6 = por %p271_p5, %p270_p4 }
   0xe   :  { %p273_p7 = pnand %p272_p6, %p266_p3 }
  0x10   :  { %276 = shalt.err (!%p273_p7)
}
  0x11   :  { %s328_s22 = smov 64   ;;  %s329_s23 = smov 4  }
  0x12   :  { %23 = dma.hbm_to_vmem [thread:$0]  %s395_s0, 128, %s18_s13, [#allocation4], %s328_s22, %s328_s22, %s329_s23  }
  0x13   :  { %s330_s26 = smov [#allocation6]   ;;  %s277_s30 = scalar_lea.hbm %s396_s1, 1024 }
  0x14   :  { %s29_s27 = sshll.u32 %s330_s26, 4  ;;  %p278_p8 = scmp.ne.s32.totalorder %s396_s1, %s277_s30  ;;  %s30_s27 = int_to_ptr.vmem [resolvable:$true] %s29_s27 }
  0x15   :  { %p281_p9 = scmp.lt.u32.totalorder %s277_s30, %s396_s1 }
  0x17   :  { %p283_p10 = pnand %p281_p9, %p278_p8 }
  0x19   :  { %286 = shalt.err (!%p283_p10)
}
  0x1a   :  { %s287_s8 = scalar_lea.vmem %s30_s27, 1024  ;;  %p292_p12 = scmp.lt.s32.totalorder %s30_s27, %s30_s27 }
  0x1b   :  { %p288_p11 = scmp.ne.s32.totalorder %s30_s27, %s287_s8  ;;  %p293_p13 = scmp.lt.s32.totalorder %s287_s8, %s287_s8 }
  0x1d   :  { %p294_p0 = por %p293_p13, %p292_p12 }
  0x1f   :  { %p295_p1 = pnand %p294_p0, %p288_p11 }
  0x21   :  { %298 = shalt.err (!%p295_p1)
}
  0x22   :  { %35 = dma.hbm_to_vmem [thread:$0]  %s396_s1, 1024, %s30_s27, [#allocation7], %s328_s22, %s328_s22, %s329_s23  }
  0x23   :  { %321 = dma.done.wait [#allocation4], 128  }
  0x24   :  { %322 = vsyncadd [#allocation4], 4294967168 }
  0x25   :  { %323 = dma.done.wait [#allocation7], 1024  }
  0x26   :  { %324 = vsyncadd [#allocation7], 4294966272  ;;  %v331_v0 = vmov 0.0   ;;  %vm332_vm0 = vmmov 0   ;;  %v246_v1 = vld [vmem:[#allocation6] sm:$0xff]   ;;  %v247_v2 = vld [vmem:[#allocation6 + $0x8] sm:$0xff]   ;;  %v176_v11 = vstv %s397_s2 }
  0x27   :  { %217 = vmatprep.subr.bf16.mxu0 %v331_v0  ;;  %233 = vmatprep.mubr.msk.bf16.mxu0 %vm332_vm0, %v331_v0  ;;  %v248_v3 = vld [vmem:[#allocation6 + $0x10] sm:$0xff]   ;;  %v249_v4 = vld [vmem:[#allocation6 + $0x18] sm:$0xff]   ;;  %v250_v5 = vld [vmem:[#allocation6 + $0x20] sm:$0xff]   ;;  %s333_s11 = smov [#allocation8]  }
  0x28   :  { %218 = vmatpush3.bf16.msra.mxu0 %v246_v1  ;;  %v251_v6 = vld [vmem:[#allocation6 + $0x28] sm:$0xff]   ;;  %v252_v7 = vld [vmem:[#allocation6 + $0x30] sm:$0xff]   ;;  %v253_v8 = vld [vmem:[#allocation6 + $0x38] sm:$0xff]   ;;  %s186_s12 = sshll.u32 %s333_s11, 4  ;;  %s187_s12 = int_to_ptr.vmem [resolvable:$true] %s186_s12 }
  0x29   :  { %219 = vmatprep.subr.bf16.mxu0 %v331_v0  ;;  %v254_v9 = vld [vmem:[#allocation3] sm:$0xff]   ;;  %s299_s13 = scalar_lea.vmem %s187_s12, 256  ;;  %p304_p3 = scmp.lt.s32.totalorder %s187_s12, %s187_s12 }
  0x2a   :  { %p300_p2 = scmp.ne.s32.totalorder %s187_s12, %s299_s13  ;;  %p305_p4 = scmp.lt.s32.totalorder %s299_s13, %s299_s13 }
  0x2c   :  { %220 = vmatpush3.bf16.msra.mxu0 %v247_v2  ;;  %p306_p5 = por %p305_p4, %p304_p3 }
  0x2d   :  { %221 = vmatprep.subr.bf16.mxu0 %v331_v0 }
  0x2e   :  { %p307_p6 = pnand %p306_p5, %p300_p2 }
  0x30   :  { %222 = vmatpush3.bf16.msra.mxu0 %v248_v3 }
  0x31   :  { %223 = vmatprep.subr.bf16.mxu0 %v331_v0 }
  0x34   :  { %224 = vmatpush3.bf16.msra.mxu0 %v249_v4 }
  0x35   :  { %225 = vmatprep.subr.bf16.mxu0 %v331_v0 }
  0x38   :  { %226 = vmatpush3.bf16.msra.mxu0 %v250_v5 }
  0x39   :  { %227 = vmatprep.subr.bf16.mxu0 %v331_v0 }
  0x3c   :  { %228 = vmatpush3.bf16.msra.mxu0 %v251_v6 }
  0x3d   :  { %229 = vmatprep.subr.bf16.mxu0 %v331_v0 }
  0x40   :  { %230 = vmatpush3.bf16.msra.mxu0 %v252_v7 }
  0x41   :  { %231 = vmatprep.subr.bf16.mxu0 %v331_v0 }
  0x44   :  { %232 = vmatpush3.bf16.msra.mxu0 %v253_v8 }
  0x47   :  { %234 = vmatmul.mubr.bf16.vlgmr.msra.gmra.mrb[0].mxu0 %v254_v9 }
 0x11a   :  { %v159_v10 = vpop.f32.mrb[0].mxu0 }
 0x11b   :  { %v235_v12 = vpop.f32.mrb[1].mxu0  ;;  %v177_v15 = vadd.f32 %v176_v11, %v159_v10 }
 0x11c   :  { %v162_v13 = vpop.f32.mrb[2].mxu0 }
 0x11d   :  { %v236_v14 = vpop.f32.mrb[3].mxu0  ;;  %v178_v16 = vadd.f32 %v176_v11, %v162_v13  ;;  %179 = vst [vmem:[#allocation8] sm:$0xff] %v177_v15 }
 0x11f   :  { %180 = vst [vmem:[#allocation8 + $0x8] sm:$0xff] %v178_v16 }
 0x120   :  { %310 = shalt.err (!%p307_p6)
}
 0x121   :  { %s311_s2 = scalar_lea.hbm %s398_s3, 256 }
 0x122   :  { %p312_p7 = scmp.ne.s32.totalorder %s398_s3, %s311_s2  ;;  %p315_p8 = scmp.lt.u32.totalorder %s311_s2, %s398_s3 }
 0x124   :  { %p317_p9 = pnand %p315_p8, %p312_p7 }
 0x126   :  { %320 = shalt.err (!%p317_p9)
}
 0x127   :  { %s334_s20 = smov 128   ;;  %s335_s21 = smov 8  }
 0x128   :  { %192 = dma.vmem_to_hbm [thread:$0]  %s187_s12, 256, %s398_s3, [#allocation5], %s334_s20, %s334_s20, %s335_s21  }
 0x129   :  { %325 = dma.done.wait [#allocation5], 256  }
 0x12a   :  { %326 = vsyncadd [#allocation5], 4294967040 }
 0x12b   :  { %196 = vsyncpa [#allocation4], 1 }
 0x12c   :  { %197 = vsyncpa [#allocation7], 1 }
 0x12d   :  { %198 = vsyncpa [#allocation5], 1 }

</bundles_post_ra>
